<compile_context>
chip_gen: v5e
topology: v5e:2x2
jax: 0.10.0
libtpu: 0.0.40
codegen_flags: <defaults>
</compile_context>

<pallas_src>
import jax
import jax.numpy as jnp
from jax import lax
from jax.experimental import pallas as pl
from jax.experimental.pallas import tpu as pltpu


def _round_up(x: int, m: int) -> int:
    return ((x + m - 1) // m) * m


def _nconv_kernel(at_ref, x_ref, o_ref):
    # at_ref: (W, V)   stationary, resident across grid steps
    # x_ref : (V, TM)  lane-dense input tile
    # o_ref : (W, TM)  lane-dense output tile
    o_ref[...] = lax.dot_general(
        at_ref[...], x_ref[...],
        dimension_numbers=(((1,), (0,)), ((), ())),   # (W,V) @ (V,TM) -> (W,TM)
        preferred_element_type=jnp.float32,
    ).astype(o_ref.dtype)


def nconv(x, A, *, tm_target: int = 2048, compute_dtype=None,
          vmem_limit_bytes: int = 32 * 1024 * 1024):
    """Pallas equivalent of torch.einsum('ncvl,vw->ncwl', x, A)."""
    N, C, V, L = x.shape
    V2, W = A.shape
    assert V == V2, "A first dim must match x node dim"
    out_dtype = x.dtype

    if compute_dtype is not None:
        # Cast in the wrapper so the DMAs move fewer bytes; MXU accumulate stays f32.
        x = x.astype(compute_dtype)
        A = A.astype(compute_dtype)

    # (N, C, V, L) -> (V, N*C*L): fold batch, channel and seq into the lane dim.
    M = N * C * L
    xs = jnp.transpose(x, (2, 0, 1, 3)).reshape(V, M)
    at = jnp.transpose(A)                                # (W, V)

    in_itemsize = jnp.dtype(xs.dtype).itemsize
    out_itemsize = jnp.dtype(out_dtype).itemsize

    # Lane tile: multiple of 128, capped by tm_target, by M itself, and by a
    # VMEM budget (double-buffered input + output tiles must fit comfortably).
    budget = vmem_limit_bytes // 2
    per_col_bytes = 2 * (V * in_itemsize + W * out_itemsize)  # 2 = double buffer
    tm_vmem_cap = max(128, (budget // per_col_bytes) // 128 * 128)
    tm = min(tm_target, _round_up(M, 128), tm_vmem_cap)

    m_pad = _round_up(M, tm)
    if m_pad != M:
        xs = jnp.pad(xs, ((0, 0), (0, m_pad - M)))

    cost = pl.CostEstimate(
        flops=2 * M * V * W,
        transcendentals=0,
        bytes_accessed=in_itemsize * (M * V + V * W) + out_itemsize * M * W,
    )

    y = pl.pallas_call(
        _nconv_kernel,
        out_shape=jax.ShapeDtypeStruct((W, m_pad), out_dtype),
        grid_spec=pltpu.PrefetchScalarGridSpec(
            num_scalar_prefetch=0,
            grid=(m_pad // tm,),
            in_specs=[
                pl.BlockSpec((W, V), lambda i: (0, 0)),    # A_T: resident
                pl.BlockSpec((V, tm), lambda i: (0, i)),   # x slab tile
            ],
            out_specs=pl.BlockSpec((W, tm), lambda i: (0, i)),
        ),
        compiler_params=pltpu.CompilerParams(
            dimension_semantics=("parallel",),             # shards across TCs on v7x
            vmem_limit_bytes=vmem_limit_bytes,             # safe on v5e/v6e/v7x
        ),
        cost_estimate=cost,
    )(at, xs)

    # (W, M_pad) -> (W, M) -> (W, N, C, L) -> (N, C, W, L)
    y = y[:, :M].reshape(W, N, C, L)
    return jnp.transpose(y, (1, 2, 0, 3))


if __name__ == "__main__":
    key = jax.random.PRNGKey(0)
    kx, ka = jax.random.split(key)

    N, C, V, L = 2, 4, 16, 16   # batch, channels, nodes, seq-len
    W = 16                      # output node dim (adjacency is V x W)

    x = jax.random.normal(kx, (N, C, V, L), dtype=jnp.float32)
    A = jax.random.normal(ka, (V, W), dtype=jnp.float32)

    out = jax.block_until_ready(nconv(x, A))

    # sanity check against plain-JAX einsum (same semantics as the torch module)
    ref = jnp.einsum("ncvl,vw->ncwl", x, A)
    assert out.shape == (N, C, W, L)
    assert jnp.allclose(out, ref, atol=1e-3, rtol=1e-3)

    print("KERNEL_OK")
</pallas_src>

<mosaic_0001>
module attributes {stable_mosaic.version = 11 : i64} {
  func.func @_nconv_kernel(%arg0: i32, %arg1: memref<16x16xf32, #tpu.memory_space<vmem>>, %arg2: memref<16x128xf32, #tpu.memory_space<vmem>>, %arg3: memref<16x128xf32, #tpu.memory_space<vmem>>) attributes {dimension_semantics = [#tpu.dimension_semantics<parallel>], iteration_bounds = array<i64: 1>, scalar_prefetch = 0 : i64, scratch_operands = 0 : i64, tpu.core_type = #tpu.core_type<tc>, window_params = [{pipeline_mode = #tpu.pipeline_mode<synchronous>, transform_indices = @transform_0, window_bounds = array<i64: 16, 16>}, {transform_indices = @transform_1, window_bounds = array<i64: 16, 128>}, {transform_indices = @transform_2, window_bounds = array<i64: 16, 128>}]} {
    %c0 = arith.constant 0 : index
    %c0_0 = arith.constant 0 : index
    %0 = vector.load %arg1[%c0, %c0_0] : memref<16x16xf32, #tpu.memory_space<vmem>>, vector<16x16xf32>
    %c0_1 = arith.constant 0 : index
    %c0_2 = arith.constant 0 : index
    %1 = vector.load %arg2[%c0_1, %c0_2] : memref<16x128xf32, #tpu.memory_space<vmem>>, vector<16x128xf32>
    %cst = arith.constant dense<0.000000e+00> : vector<16x128xf32>
    %2 = tpu.matmul %0, %1, %cst {dimension_numbers = #tpu.dot_dimension_numbers<[1], [0], [0], [1], [0, 0, 1, 1], [], []>} : vector<16x16xf32>, vector<16x128xf32>, vector<16x128xf32> -> vector<16x128xf32>
    %c0_3 = arith.constant 0 : index
    %c0_4 = arith.constant 0 : index
    %3 = vector.load %arg3[%c0_3, %c0_4] : memref<16x128xf32, #tpu.memory_space<vmem>>, vector<16x128xf32>
    tpu.vector_store %arg3[%c0_3, %c0_4], %2 {strides = array<i32>} : memref<16x128xf32, #tpu.memory_space<vmem>>, vector<16x128xf32>,
    return
  }
  func.func @transform_0(%arg0: i32) -> (i32, i32) {
    %c0_i32 = arith.constant 0 : i32
    %c0_i32_0 = arith.constant 0 : i32
    %c0_i32_1 = arith.constant 0 : i32
    return %c0_i32, %c0_i32_0 : i32, i32
  }
  func.func @transform_1(%arg0: i32) -> (i32, i32) {
    %c0_i32 = arith.constant 0 : i32
    %c0_i32_0 = arith.constant 0 : i32
    return %c0_i32, %arg0 : i32, i32
  }
  func.func @transform_2(%arg0: i32) -> (i32, i32) {
    %c0_i32 = arith.constant 0 : i32
    %c0_i32_0 = arith.constant 0 : i32
    return %c0_i32, %arg0 : i32, i32
  }
}

</mosaic_0001>

<bundles_post_ra>
// kernel: tpu_custom_call.1
= control target key start
LH: loop header
LB: loop body
LE: loop exit
PB: predicated region body
PF: predicated region fallthrough
CT: control target
= control target key end

     0   :  { %7 = vsyncpa [#allocation3], 0  ;;  %s225_s0 = inlined_call_operand.hbm [shape: f32[16,16], index: 0, kind: input, shape index: {}]   ;;  %s226_s1 = inlined_call_operand.hbm [shape: f32[16,128], index: 1, kind: input, shape index: {}]   ;;  %s227_s2 = inlined_call_operand.hbm [shape: f32[16,128], index: 2, kind: output, shape index: {}]  }
   0x1   :  { %8 = vsyncpa [#allocation6], 0 }
   0x2   :  { %9 = vsyncpa [#allocation4], 0  ;;  %s14_s11 = sshll.u32 %s225_s0, 4  ;;  %s187_s12 = smov [#allocation2]   ;;  %s15_s11 = int_to_ptr.hbm [resolvable:$true] %s14_s11 }
   0x3   :  { %s16_s13 = sshll.u32 %s187_s12, 4  ;;  %s27_s16 = sshll.u32 %s226_s1, 4  ;;  %s17_s13 = int_to_ptr.vmem [resolvable:$true] %s16_s13  ;;  %s28_s16 = int_to_ptr.hbm [resolvable:$true] %s27_s16 }
   0x4   :  { %s188_s17 = smov 128   ;;  %s189_s18 = smov 8  }
   0x5   :  { %22 = dma.hbm_to_vmem [thread:$0]  %s15_s11, 256, %s17_s13, [#allocation3], %s188_s17, %s188_s17, %s189_s18  }
   0x6   :  { %s190_s19 = smov [#allocation5]  }
   0x7   :  { %s29_s20 = sshll.u32 %s190_s19, 4  ;;  %s30_s20 = int_to_ptr.vmem [resolvable:$true] %s29_s20 }
   0x8   :  { %35 = dma.hbm_to_vmem [thread:$0]  %s28_s16, 256, %s30_s20, [#allocation6], %s188_s17, %s188_s17, %s189_s18  }
   0x9   :  { %181 = dma.done.wait [#allocation3], 256  }
   0xa   :  { %182 = vsyncadd [#allocation3], 4294967040 }
   0xb   :  { %183 = dma.done.wait [#allocation6], 256  }
   0xc   :  { %184 = vsyncadd [#allocation6], 4294967040  ;;  %v47_v0 = vld [vmem:[#allocation5 + $0x8] sm:$0xff]  ;;  %v46_v1 = vld [vmem:[#allocation5] sm:$0xff]  ;;  %vm48_vm0 = vcmask 130048   ;;  %s191_s0 = smov [#allocation7]  }
   0xd   :  { %69 = vmatpush.msra.mxu0 %v47_v0  ;;  %102 = vmatpush.msra.mxu1 %v47_v0  ;;  %v44_v2 = vld [vmem:[#allocation2] sm:$0xff]  ;;  %v45_v3 = vld [vmem:[#allocation2 + $0x8] sm:$0xff]  ;;  %s84_s1 = sshll.u32 %s191_s0, 4  ;;  %s86_s23 = sshll.u32 %s227_s2, 4  ;;  %s85_s1 = int_to_ptr.vmem [resolvable:$true] %s84_s1  ;;  %s87_s23 = int_to_ptr.hbm [resolvable:$true] %s86_s23 }
   0xf   :  { %70 = vmatpush.msra.mxu0 %v46_v1  ;;  %103 = vmatpush.msra.mxu1 %v46_v1 }
  0x10   :  { %100 = vmatmul.msk.f32.vlgmr.msra.gmra.mxu0 %vm48_vm0, %v44_v2  ;;  %101 = vmatmul.msk.f32.vlgmr.msra.gmra.mxu1 %vm48_vm0, %v45_v3 }
  0x8d   :  { %v72_v4 = vpop.f32.mrf.mxu0  ;;  %v75_v5 = vpop.f32.mrf.mxu1 }
  0x8e   :  { %78 = vst [vmem:[#allocation7] sm:$0xff] %v72_v4 }
  0x8f   :  { %79 = vst [vmem:[#allocation7 + $0x8] sm:$0xff] %v75_v5 }
  0x90   :  { %92 = dma.vmem_to_hbm [thread:$0]  %s85_s1, 256, %s87_s23, [#allocation4], %s188_s17, %s188_s17, %s189_s18  }
  0x91   :  { %185 = dma.done.wait [#allocation4], 256  }
  0x92   :  { %186 = vsyncadd [#allocation4], 4294967040 }
  0x93   :  { %97 = vsyncpa [#allocation3], 1 }
  0x94   :  { %98 = vsyncpa [#allocation6], 1 }
  0x95   :  { %99 = vsyncpa [#allocation4], 1 }

</bundles_post_ra>
